<compile_context>
chip_gen: v7x
topology: tpu7x:2x2x1
jax: 0.10.0
libtpu: 0.0.40
codegen_flags: <defaults>
</compile_context>

<pallas_src>
import jax
import jax.numpy as jnp
from jax.experimental import pallas as pl
from jax.experimental.pallas import tpu as pltpu


_LANES = 128          # vreg lane width
_SUBLANES = 8         # vreg sublane count (f32)
_MAX_BLOCK_ROWS = 4096  # 4096 * 128 * 4 B = 2 MiB per buffer (x2 in/out, x2 pipeline = 8 MiB)


def _identity_copy_kernel(x_ref, o_ref):
    # Whole-tile copy: load the lane-dense VMEM block and store it unchanged.
    o_ref[...] = x_ref[...]


def _identity_via_pallas(x: jax.Array) -> jax.Array:
    """Identity copy of `x` through a lane-dense, large-block Pallas kernel."""
    orig_shape = x.shape
    n = x.size

    # Flatten and pad to a multiple of (8 sublanes * 128 lanes) so the slab is
    # a clean (rows, 128) layout whose rows are a multiple of 8.
    flat = x.reshape(-1)
    pad = (-n) % (_SUBLANES * _LANES)
    if pad:
        flat = jnp.pad(flat, (0, pad))
    rows = flat.size // _LANES
    slab = flat.reshape(rows, _LANES)

    # Largest block that fits comfortably in scoped VMEM on every generation
    # (v5e 16 MiB / v6e 32 MiB / v7x 32 MiB defaults); rows is already a
    # multiple of 8, and cdiv handles a partial final block.
    block_rows = rows if rows <= _MAX_BLOCK_ROWS else _MAX_BLOCK_ROWS
    grid = (pl.cdiv(rows, block_rows),)

    out = pl.pallas_call(
        _identity_copy_kernel,
        out_shape=jax.ShapeDtypeStruct((rows, _LANES), slab.dtype),
        grid=grid,
        in_specs=[pl.BlockSpec((block_rows, _LANES), lambda i: (i, 0))],
        out_specs=pl.BlockSpec((block_rows, _LANES), lambda i: (i, 0)),
        input_output_aliases={0: 0},
        compiler_params=pltpu.CompilerParams(
            dimension_semantics=("parallel",),
        ),
    )(slab)

    out_flat = out.reshape(-1)
    if pad:
        out_flat = out_flat[:n]
    return out_flat.reshape(orig_shape)


def dummy_body_forward(x: jax.Array, *, use_kernel: bool = False) -> jax.Array:
    """Identity forward pass of DummyBody.

    Default path returns x directly (the correct optimization for an identity:
    zero HBM traffic, zero launch cost).  `use_kernel=True` routes through the
    optimized Pallas copy kernel instead.
    """
    if not use_kernel:
        return x
    return _identity_via_pallas(x)


class DummyBodyJax:
    """Mirror of the PyTorch DummyBody: no parameters, identity forward."""

    def __init__(self, state_dim: int, use_kernel: bool = False):
        self.feature_dim = state_dim
        self.use_kernel = use_kernel

    def __call__(self, x: jax.Array) -> jax.Array:
        return dummy_body_forward(x, use_kernel=self.use_kernel)


if __name__ == "__main__":
    key = jax.random.PRNGKey(0)

    # Small shapes consistent with DDPG body usage: (batch, state_dim).
    batch, state_dim = 2, 32
    x = jax.random.normal(key, (batch, state_dim), dtype=jnp.float32)

    # Recommended zero-cost path.
    body = DummyBodyJax(state_dim)                      # use_kernel=False
    y_fast = jax.block_until_ready(body(x))
    assert y_fast.shape == x.shape and y_fast.dtype == x.dtype
    assert jnp.array_equal(y_fast, x), "short-circuit identity mismatch"

    # Kernel path (lane-dense slab + padding, single block here).
    body_k = DummyBodyJax(state_dim, use_kernel=True)
    y_kern = jax.block_until_ready(body_k(x))
    assert y_kern.shape == x.shape and y_kern.dtype == x.dtype
    assert jnp.array_equal(y_kern, x), "pallas identity kernel mismatch"

    # A second, slightly larger shape that is not a multiple of 1024 elements,
    # exercising the padding/unpadding path of the kernel.
    key2 = jax.random.PRNGKey(1)
    x2 = jax.random.normal(key2, (64, 200), dtype=jnp.float32)
    y2 = jax.block_until_ready(dummy_body_forward(x2, use_kernel=True))
    assert jnp.array_equal(y2, x2), "pallas identity kernel mismatch (padded)"

    print("KERNEL_OK")
</pallas_src>

<mosaic_0001>
module attributes {stable_mosaic.version = 11 : i64} {
  func.func @_identity_copy_kernel(%arg0: i32, %arg1: memref<8x128xf32, #tpu.memory_space<vmem>>, %arg2: memref<8x128xf32, #tpu.memory_space<vmem>>) attributes {dimension_semantics = [#tpu.dimension_semantics<parallel>], iteration_bounds = array<i64: 1>, scalar_prefetch = 0 : i64, scratch_operands = 0 : i64, tpu.core_type = #tpu.core_type<tc>, window_params = [{transform_indices = @transform_0, window_bounds = array<i64: 8, 128>}, {transform_indices = @transform_1, window_bounds = array<i64: 8, 128>}]} {
    %c0 = arith.constant 0 : index
    %c0_0 = arith.constant 0 : index
    %0 = vector.load %arg1[%c0, %c0_0] : memref<8x128xf32, #tpu.memory_space<vmem>>, vector<8x128xf32>
    %c0_1 = arith.constant 0 : index
    %c0_2 = arith.constant 0 : index
    %1 = vector.load %arg2[%c0_1, %c0_2] : memref<8x128xf32, #tpu.memory_space<vmem>>, vector<8x128xf32>
    tpu.vector_store %arg2[%c0_1, %c0_2], %0 {strides = array<i32>} : memref<8x128xf32, #tpu.memory_space<vmem>>, vector<8x128xf32>,
    return
  }
  func.func @transform_0(%arg0: i32) -> (i32, i32) {
    %c0_i32 = arith.constant 0 : i32
    %c0_i32_0 = arith.constant 0 : i32
    return %arg0, %c0_i32 : i32, i32
  }
  func.func @transform_1(%arg0: i32) -> (i32, i32) {
    %c0_i32 = arith.constant 0 : i32
    %c0_i32_0 = arith.constant 0 : i32
    return %arg0, %c0_i32 : i32, i32
  }
}

</mosaic_0001>

<bundles_post_ra>
// kernel: tpu_custom_call.1
= control target key start
LH: loop header
LB: loop body
LE: loop exit
PB: predicated region body
PF: predicated region fallthrough
CT: control target
= control target key end

     0   :  { %6 = vsyncpa [#allocation3], 0  ;;  %s124_s0 = inlined_call_operand.hbm [shape: f32[8,128], index: 0, kind: input, shape index: {}, may-alias: {0,1}]   ;;  %s125_s1 = inlined_call_operand.hbm [shape: f32[8,128], index: 1, kind: output, shape index: {}, may-alias: {0,1}]  }
   0x1   :  { %7 = vsyncpa [#allocation4], 0  ;;  %s88_s6 = smov [#allocation2]   ;;  %s40_s10 = scalar_lea.hbm %s124_s0, 128 }
   0x2   :  { %s14_s7 = sshll.u32 %s88_s6, 4  ;;  %p41_p0 = scmp.ne.s32.totalorder %s124_s0, %s40_s10  ;;  %s15_s7 = int_to_ptr.vmem [resolvable:$true] %s14_s7 }
   0x3   :  { %p44_p1 = scmp.lt.u32.totalorder %s40_s10, %s124_s0 }
   0x5   :  { %p46_p2 = pnand %p44_p1, %p41_p0 }
   0x7   :  { %49 = shalt.err (!%p46_p2)
}
   0x8   :  { %s50_s15 = scalar_lea.vmem %s15_s7, 128  ;;  %p55_p4 = scmp.lt.s32.totalorder %s15_s7, %s15_s7 }
   0x9   :  { %p51_p3 = scmp.ne.s32.totalorder %s15_s7, %s50_s15  ;;  %p56_p5 = scmp.lt.s32.totalorder %s50_s15, %s50_s15 }
   0xb   :  { %p57_p6 = por %p56_p5, %p55_p4 }
   0xd   :  { %p58_p7 = pnand %p57_p6, %p51_p3 }
   0xf   :  { %61 = shalt.err (!%p58_p7)
}
  0x10   :  { %17 = dma.hbm_to_vmem [thread:$0]  %s124_s0, 128, %s15_s7, [#allocation3]  }
  0x11   :  { %84 = dma.done.wait [#allocation3], 128  }
  0x12   :  { %85 = vsyncadd [#allocation3], 4294967168  ;;  %s89_s18 = smov [#allocation5]   ;;  %v21_v0 = vld [vmem:[#allocation2] sm:$0xff] }
  0x13   :  { %s29_s19 = sshll.u32 %s89_s18, 4  ;;  %22 = vst [vmem:[#allocation5] sm:$0xff] %v21_v0  ;;  %s30_s19 = int_to_ptr.vmem [resolvable:$true] %s29_s19 }
  0x14   :  { %s62_s20 = scalar_lea.vmem %s30_s19, 128  ;;  %p67_p9 = scmp.lt.s32.totalorder %s30_s19, %s30_s19 }
  0x15   :  { %p63_p8 = scmp.ne.s32.totalorder %s30_s19, %s62_s20  ;;  %p68_p10 = scmp.lt.s32.totalorder %s62_s20, %s62_s20 }
  0x17   :  { %p69_p11 = por %p68_p10, %p67_p9 }
  0x19   :  { %p70_p12 = pnand %p69_p11, %p63_p8 }
  0x1b   :  { %73 = shalt.err (!%p70_p12)
}
  0x1c   :  { %s74_s23 = scalar_lea.hbm %s125_s1, 128 }
  0x1d   :  { %p75_p13 = scmp.ne.s32.totalorder %s125_s1, %s74_s23  ;;  %p78_p0 = scmp.lt.u32.totalorder %s74_s23, %s125_s1 }
  0x1f   :  { %p80_p1 = pnand %p78_p0, %p75_p13 }
  0x21   :  { %83 = shalt.err (!%p80_p1)
}
  0x22   :  { %32 = dma.vmem_to_hbm [thread:$0]  %s30_s19, 128, %s125_s1, [#allocation4]  }
  0x23   :  { %86 = dma.done.wait [#allocation4], 128  }
  0x24   :  { %87 = vsyncadd [#allocation4], 4294967168 }
  0x25   :  { %36 = vsyncpa [#allocation3], 1 }
  0x26   :  { %37 = vsyncpa [#allocation4], 1 }

</bundles_post_ra>
